<compile_context>
chip_gen: v7x
topology: tpu7x:2x2x1
jax: 0.10.0
libtpu: 0.0.40
codegen_flags: <defaults>
</compile_context>

<pallas_src>
import functools
import math

import jax
import jax.numpy as jnp
from jax import lax
from jax.experimental import pallas as pl
from jax.experimental.pallas import tpu as pltpu

NUM_JOINTS = 17
# COCO flip pairs (FLIP_CONFIG['COCO'])
FLIP_INDEX = jnp.array([0, 2, 1, 4, 3, 6, 5, 8, 7, 10, 9, 12, 11, 14, 13, 16, 15],
                       dtype=jnp.int32)

# Safe scoped-VMEM request on all generations (v5e default is 16 MiB; v6e/v7x 32 MiB).
_VMEM_LIMIT_BYTES = 32 * 1024 * 1024


def _pick_hw_tile(hw):
    """Largest HW tile (multiple of 128, <= 2048 rows) that divides HW.

    Sized so (x tile + feat + outputs) x 2 buffers stays well under the 32 MiB
    scoped limit (and v7x's 64 MiB physical VMEM) at production Cin/D <= 512.
    """
    for cand in (2048, 1024, 512, 256, 128):
        if hw % cand == 0:
            return cand
    return hw  # fall back to the full extent (block == full array dim)


# --------------------------------------------------------------------------
# Phase 1: per-joint attention context via online softmax over HW tiles.
# --------------------------------------------------------------------------
def _ctx_kernel(x_ref, wbb_ref, bbb_ref, q_ref, gamma_ref, beta_ref,
                ctx_ref, m_sc, l_sc, acc_sc, *, scale):
    """Grid = (batch, hw_tiles); hw_tiles is the (arbitrary) reduction axis.

    x_ref   : (1, Cin, hw_t)  bf16   input features, channel-major tile
    wbb_ref : (D, Cin)        bf16   backbone 1x1-conv weight (transposed)
    bbb_ref : (D, 1)          f32    backbone bias
    q_ref   : (J, D)          bf16   learned joint queries
    gamma_ref, beta_ref : (1, D) f32 attention-norm affine (AN_NUM_AFFINE=1)
    ctx_ref : (1, J, D)       f32    output normalized per-joint context
    m_sc, l_sc : (J, 1) f32 ; acc_sc : (J, D) f32   online-softmax scratch
    """
    t = pl.program_id(1)

    @pl.when(t == 0)
    def _():
        m_sc[...] = jnp.full_like(m_sc, -jnp.inf)
        l_sc[...] = jnp.zeros_like(l_sc)
        acc_sc[...] = jnp.zeros_like(acc_sc)

    x = x_ref[0]                                                    # (Cin, hw_t) bf16

    # Backbone 1x1 conv as channel-major matmul + ReLU (f32 accumulate).
    feat = jnp.dot(wbb_ref[...], x, preferred_element_type=jnp.float32)
    feat = jnp.maximum(feat + bbb_ref[...], 0.0)                    # (D, hw_t) f32
    featb = feat.astype(jnp.bfloat16)

    # Joint-query cross-attention scores for this spatial tile (NN matmul).
    s = jnp.dot(q_ref[...], featb, preferred_element_type=jnp.float32) * scale  # (J, hw_t)

    # Online softmax accumulation (normalization deferred to the finalize step).
    m_new = jnp.maximum(m_sc[...], jnp.max(s, axis=-1, keepdims=True))
    alpha = jnp.exp(m_sc[...] - m_new)                              # (J, 1)
    p = jnp.exp(s - m_new)                                          # (J, hw_t) f32
    l_sc[...] = alpha * l_sc[...] + jnp.sum(p, axis=-1, keepdims=True)
    contrib = lax.dot_general(p.astype(jnp.bfloat16), featb,
                              (((1,), (1,)), ((), ())),
                              preferred_element_type=jnp.float32)   # (J, D)
    acc_sc[...] = alpha * acc_sc[...] + contrib
    m_sc[...] = m_new

    @pl.when(t == pl.num_programs(1) - 1)
    def _():
        inv_l = pl.reciprocal(l_sc[...], approx=True)               # EUP, nearly free
        ctx = acc_sc[...] * inv_l                                   # (J, D)
        # Attention normalization (layer-norm over D) with affine.
        mu = jnp.mean(ctx, axis=-1, keepdims=True)
        var = jnp.mean((ctx - mu) * (ctx - mu), axis=-1, keepdims=True)
        ctx_ref[0] = (gamma_ref[...] * (ctx - mu) * lax.rsqrt(var + 1e-5)
                      + beta_ref[...])


# --------------------------------------------------------------------------
# Phase 2: heatmap head + local contextual refinement (fully parallel grid).
# --------------------------------------------------------------------------
def _heatmap_kernel(x_ref, wbb_ref, bbb_ref, whm_ref, bhm_ref, ctx_ref, hm_ref):
    """Grid = (batch, hw_tiles), both parallel.

    whm_ref : (J, D) bf16 heatmap-head weight (transposed), bhm_ref : (J, 1) f32
    ctx_ref : (1, J, D) f32 normalized context from phase 1
    hm_ref  : (1, J, hw_t) f32 output refined local heatmaps (lane-dense)
    """
    x = x_ref[0]                                                    # (Cin, hw_t) bf16
    feat = jnp.dot(wbb_ref[...], x, preferred_element_type=jnp.float32)
    feat = jnp.maximum(feat + bbb_ref[...], 0.0)                    # (D, hw_t)
    featb = feat.astype(jnp.bfloat16)

    # Coarse keypoint heatmaps.
    hm = jnp.dot(whm_ref[...], featb, preferred_element_type=jnp.float32)
    hm = hm + bhm_ref[...]                                          # (J, hw_t)

    # Local contextual refinement: ctxn (J, D) @ feat (D, hw_t).
    refine = jnp.dot(ctx_ref[0].astype(jnp.bfloat16), featb,
                     preferred_element_type=jnp.float32)            # (J, hw_t)
    hm_ref[0] = hm + refine


# --------------------------------------------------------------------------
# Host-side wrappers.
# --------------------------------------------------------------------------
def _run_kernels(x_flat, params, hw_tile=None):
    """x_flat: (B, Cin, HW) bf16. Returns (hm (B, J, HW) f32, ctx (B, J, D) f32)."""
    b, cin, hw = x_flat.shape
    d = params["wbb_t"].shape[0]
    j = NUM_JOINTS
    if hw_tile is None:
        hw_tile = _pick_hw_tile(hw)
    assert hw % hw_tile == 0
    n_t = hw // hw_tile
    scale = 1.0 / math.sqrt(d)

    # ---- phase 1: attention context -------------------------------------
    ctx_cost = pl.CostEstimate(
        flops=2 * b * hw * (cin * d + 2 * d * j),
        transcendentals=b * hw * j,
        bytes_accessed=b * hw * cin * 2 + b * j * d * 4,
    )
    ctxn = pl.pallas_call(
        functools.partial(_ctx_kernel, scale=scale),
        out_shape=jax.ShapeDtypeStruct((b, j, d), jnp.float32),
        grid_spec=pltpu.PrefetchScalarGridSpec(
            num_scalar_prefetch=0,
            grid=(b, n_t),
            in_specs=[
                pl.BlockSpec((1, cin, hw_tile), lambda bi, ti: (bi, 0, ti)),
                pl.BlockSpec((d, cin), lambda bi, ti: (0, 0)),
                pl.BlockSpec((d, 1), lambda bi, ti: (0, 0)),
                pl.BlockSpec((j, d), lambda bi, ti: (0, 0)),
                pl.BlockSpec((1, d), lambda bi, ti: (0, 0)),
                pl.BlockSpec((1, d), lambda bi, ti: (0, 0)),
            ],
            out_specs=pl.BlockSpec((1, j, d), lambda bi, ti: (bi, 0, 0)),
            scratch_shapes=[
                pltpu.VMEM((j, 1), jnp.float32),   # m
                pltpu.VMEM((j, 1), jnp.float32),   # l
                pltpu.VMEM((j, d), jnp.float32),   # acc
            ],
        ),
        compiler_params=pltpu.CompilerParams(
            dimension_semantics=("parallel", "arbitrary"),
            vmem_limit_bytes=_VMEM_LIMIT_BYTES),
        cost_estimate=ctx_cost,
    )(x_flat, params["wbb_t"], params["bbb_t"], params["q"],
      params["gamma"], params["beta"])

    # ---- phase 2: refined heatmaps (lane-dense (J, HW) output) -----------
    hm_cost = pl.CostEstimate(
        flops=2 * b * hw * (cin * d + 2 * d * j),
        transcendentals=0,
        bytes_accessed=b * hw * cin * 2 + b * j * hw * 4,
    )
    hm = pl.pallas_call(
        _heatmap_kernel,
        out_shape=jax.ShapeDtypeStruct((b, j, hw), jnp.float32),
        grid_spec=pltpu.PrefetchScalarGridSpec(
            num_scalar_prefetch=0,
            grid=(b, n_t),
            in_specs=[
                pl.BlockSpec((1, cin, hw_tile), lambda bi, ti: (bi, 0, ti)),
                pl.BlockSpec((d, cin), lambda bi, ti: (0, 0)),
                pl.BlockSpec((d, 1), lambda bi, ti: (0, 0)),
                pl.BlockSpec((j, d), lambda bi, ti: (0, 0)),
                pl.BlockSpec((j, 1), lambda bi, ti: (0, 0)),
                pl.BlockSpec((1, j, d), lambda bi, ti: (bi, 0, 0)),
            ],
            out_specs=pl.BlockSpec((1, j, hw_tile), lambda bi, ti: (bi, 0, ti)),
        ),
        compiler_params=pltpu.CompilerParams(
            dimension_semantics=("parallel", "parallel"),
            vmem_limit_bytes=_VMEM_LIMIT_BYTES),
        cost_estimate=hm_cost,
    )(x_flat, params["wbb_t"], params["bbb_t"], params["whm_t"],
      params["bhm_t"], ctxn)

    return hm, ctxn


def init_params(key, cin, d):
    ks = jax.random.split(key, 3)
    return {
        # channel-major (transposed) weights, stored bf16 for the MXU.
        "wbb_t": (jax.random.normal(ks[0], (d, cin), jnp.float32) * 0.1
                  ).astype(jnp.bfloat16),
        "bbb_t": jnp.zeros((d, 1), jnp.float32),
        "whm_t": (jax.random.normal(ks[1], (NUM_JOINTS, d), jnp.float32) * 0.1
                  ).astype(jnp.bfloat16),
        "bhm_t": jnp.zeros((NUM_JOINTS, 1), jnp.float32),
        "q": (jax.random.normal(ks[2], (NUM_JOINTS, d), jnp.float32) * 0.1
              ).astype(jnp.bfloat16),
        # AN_NUM_AFFINE = 1 affine group for attention normalization.
        "gamma": jnp.ones((1, d), jnp.float32),
        "beta": jnp.zeros((1, d), jnp.float32),
    }


@functools.partial(jax.jit, static_argnames=("flip_test", "hw_tile"))
def local_ca_pose_forward(images_nchw, params, flip_test=True, hw_tile=None):
    """Inference path. images_nchw: (N, C, H, W) float32.

    Returns:
      heatmaps: (N, 17, H, W)  refined local heatmaps (flip-test averaged)
      ctx:      (N, 17, D)     per-joint context features (unflipped pass)
    """
    n, c, h, w = images_nchw.shape

    # Fuse the flip-test pass into one batched kernel invocation (2N batch).
    if flip_test:
        imgs = jnp.concatenate([images_nchw, images_nchw[:, :, :, ::-1]], axis=0)
    else:
        imgs = images_nchw
    b = imgs.shape[0]

    # NCHW is already channel-major: flatten spatial dims, no transposes.
    x_flat = imgs.reshape(b, c, h * w).astype(jnp.bfloat16)
    hm_flat, ctx = _run_kernels(x_flat, params, hw_tile=hw_tile)
    hm_all = hm_flat.reshape(b, NUM_JOINTS, h, w)

    if flip_test:
        hm = hm_all[:n]
        # flip back horizontally and swap left/right joints per FLIP_CONFIG.
        hm_f = hm_all[n:, :, :, ::-1][:, FLIP_INDEX, :, :]
        hm = 0.5 * (hm + hm_f)
        ctx = ctx[:n]
    else:
        hm = hm_all
    return hm, ctx


# --------------------------------------------------------------------------
# Pure-JAX f32 reference (same math as the original kernel) for validation.
# --------------------------------------------------------------------------
def _reference(images_nchw, params, flip_test=True):
    n, c, h, w = images_nchw.shape
    wbb = params["wbb_t"].astype(jnp.float32).T
    bbb = params["bbb_t"].astype(jnp.float32).T
    whm = params["whm_t"].astype(jnp.float32).T
    bhm = params["bhm_t"].astype(jnp.float32).T
    q = params["q"].astype(jnp.float32)
    gamma, beta = params["gamma"], params["beta"]
    d = wbb.shape[1]

    def single(imgs):
        x = jnp.transpose(imgs, (0, 2, 3, 1)).reshape(n, h * w, c)
        feat = jnp.maximum(x @ wbb + bbb, 0.0)
        hm = feat @ whm + bhm
        s = jnp.einsum("jd,nhd->njh", q, feat) * (1.0 / math.sqrt(d))
        attn = jax.nn.softmax(s, axis=-1)
        ctx = jnp.einsum("njh,nhd->njd", attn, feat)
        mu = jnp.mean(ctx, axis=-1, keepdims=True)
        var = jnp.mean((ctx - mu) ** 2, axis=-1, keepdims=True)
        ctxn = gamma * (ctx - mu) * lax.rsqrt(var + 1e-5) + beta
        hm = hm + jnp.einsum("nhd,njd->nhj", feat, ctxn)
        hm = jnp.transpose(hm.reshape(n, h, w, NUM_JOINTS), (0, 3, 1, 2))
        return hm, ctxn

    hm, ctx = single(images_nchw)
    if flip_test:
        hm_f, _ = single(images_nchw[:, :, :, ::-1])
        hm_f = hm_f[:, :, :, ::-1][:, FLIP_INDEX]
        hm = 0.5 * (hm + hm_f)
    return hm, ctx


if __name__ == "__main__":
    key = jax.random.PRNGKey(0)
    k_img, k_par = jax.random.split(key)

    N, C, H, W = 2, 4, 16, 16
    D = 32

    images = jax.random.normal(k_img, (N, C, H, W), jnp.float32)
    params = init_params(k_par, C, D)

    # hw_tile=128 forces >1 spatial tile so the online-softmax reduction path
    # (m/l/acc scratch across HW tiles) is exercised at this toy resolution.
    heatmaps, ctx = local_ca_pose_forward(images, params, flip_test=True, hw_tile=128)
    jax.block_until_ready((heatmaps, ctx))

    assert heatmaps.shape == (N, NUM_JOINTS, H, W)
    assert ctx.shape == (N, NUM_JOINTS, D)

    # Loose tolerance: kernel uses bf16 matmul operands, reference is pure f32.
    hm_ref, ctx_ref = _reference(images, params, flip_test=True)
    assert float(jnp.max(jnp.abs(heatmaps - hm_ref))) < 0.1
    assert float(jnp.max(jnp.abs(ctx - ctx_ref))) < 0.1

    print("KERNEL_OK")
</pallas_src>

<mosaic_0001>
module attributes {stable_mosaic.version = 11 : i64} {
  func.func @_heatmap_kernel(%arg0: i32, %arg1: i32, %arg2: memref<1x4x128xbf16, #tpu.memory_space<vmem>>, %arg3: memref<32x4xbf16, #tpu.memory_space<vmem>>, %arg4: memref<32x1xf32, #tpu.memory_space<vmem>>, %arg5: memref<17x32xbf16, #tpu.memory_space<vmem>>, %arg6: memref<17x1xf32, #tpu.memory_space<vmem>>, %arg7: memref<1x17x32xf32, #tpu.memory_space<vmem>>, %arg8: memref<1x17x128xf32, #tpu.memory_space<vmem>>) attributes {dimension_semantics = [#tpu.dimension_semantics<parallel>, #tpu.dimension_semantics<parallel>], iteration_bounds = array<i64: 4, 2>, scalar_prefetch = 0 : i64, scratch_operands = 0 : i64, tpu.core_type = #tpu.core_type<tc>, window_params = [{transform_indices = @transform_0, window_bounds = array<i64: 1, 4, 128>}, {pipeline_mode = #tpu.pipeline_mode<synchronous>, transform_indices = @transform_1, window_bounds = array<i64: 32, 4>}, {pipeline_mode = #tpu.pipeline_mode<synchronous>, transform_indices = @transform_2, window_bounds = array<i64: 32, 1>}, {pipeline_mode = #tpu.pipeline_mode<synchronous>, transform_indices = @transform_3, window_bounds = array<i64: 17, 32>}, {pipeline_mode = #tpu.pipeline_mode<synchronous>, transform_indices = @transform_4, window_bounds = array<i64: 17, 1>}, {transform_indices = @transform_5, window_bounds = array<i64: 1, 17, 32>}, {transform_indices = @transform_6, window_bounds = array<i64: 1, 17, 128>}]} {
    %c0 = arith.constant 0 : index
    %c0_0 = arith.constant 0 : index
    %c0_1 = arith.constant 0 : index
    %0 = vector.load %arg2[%c0, %c0_0, %c0_1] : memref<1x4x128xbf16, #tpu.memory_space<vmem>>, vector<1x4x128xbf16>
    %1 = vector.shape_cast %0 : vector<1x4x128xbf16> to vector<4x128xbf16>
    %c0_2 = arith.constant 0 : index
    %c0_3 = arith.constant 0 : index
    %2 = vector.load %arg3[%c0_2, %c0_3] : memref<32x4xbf16, #tpu.memory_space<vmem>>, vector<32x4xbf16>
    %cst = arith.constant dense<0.000000e+00> : vector<32x128xf32>
    %3 = tpu.matmul %2, %1, %cst {dimension_numbers = #tpu.dot_dimension_numbers<[1], [0], [0], [1], [0, 0, 1, 1], [], []>} : vector<32x4xbf16>, vector<4x128xbf16>, vector<32x128xf32> -> vector<32x128xf32>
    %c0_4 = arith.constant 0 : index
    %c0_5 = arith.constant 0 : index
    %4 = vector.load %arg4[%c0_4, %c0_5] : memref<32x1xf32, #tpu.memory_space<vmem>>, vector<32x1xf32>
    %5 = vector.broadcast %4 : vector<32x1xf32> to vector<32x128xf32>
    %6 = arith.addf %3, %5 : vector<32x128xf32>
    %cst_6 = arith.constant 0.000000e+00 : f32
    %7 = vector.broadcast %cst_6 : f32 to vector<32x128xf32>
    %8 = arith.maximumf %6, %7 : vector<32x128xf32>
    %9 = arith.truncf %8 : vector<32x128xf32> to vector<32x128xbf16>
    %c0_7 = arith.constant 0 : index
    %c0_8 = arith.constant 0 : index
    %10 = vector.load %arg5[%c0_7, %c0_8] : memref<17x32xbf16, #tpu.memory_space<vmem>>, vector<17x32xbf16>
    %cst_9 = arith.constant dense<0.000000e+00> : vector<17x128xf32>
    %11 = tpu.matmul %10, %9, %cst_9 {dimension_numbers = #tpu.dot_dimension_numbers<[1], [0], [0], [1], [0, 0, 1, 1], [], []>} : vector<17x32xbf16>, vector<32x128xbf16>, vector<17x128xf32> -> vector<17x128xf32>
    %c0_10 = arith.constant 0 : index
    %c0_11 = arith.constant 0 : index
    %12 = vector.load %arg6[%c0_10, %c0_11] : memref<17x1xf32, #tpu.memory_space<vmem>>, vector<17x1xf32>
    %13 = vector.broadcast %12 : vector<17x1xf32> to vector<17x128xf32>
    %14 = arith.addf %11, %13 : vector<17x128xf32>
    %c0_12 = arith.constant 0 : index
    %c0_13 = arith.constant 0 : index
    %c0_14 = arith.constant 0 : index
    %15 = vector.load %arg7[%c0_12, %c0_13, %c0_14] : memref<1x17x32xf32, #tpu.memory_space<vmem>>, vector<1x17x32xf32>
    %16 = vector.shape_cast %15 : vector<1x17x32xf32> to vector<17x32xf32>
    %17 = arith.truncf %16 : vector<17x32xf32> to vector<17x32xbf16>
    %cst_15 = arith.constant dense<0.000000e+00> : vector<17x128xf32>
    %18 = tpu.matmul %17, %9, %cst_15 {dimension_numbers = #tpu.dot_dimension_numbers<[1], [0], [0], [1], [0, 0, 1, 1], [], []>} : vector<17x32xbf16>, vector<32x128xbf16>, vector<17x128xf32> -> vector<17x128xf32>
    %19 = arith.addf %14, %18 : vector<17x128xf32>
    %c0_16 = arith.constant 0 : index
    %c0_17 = arith.constant 0 : index
    %c0_18 = arith.constant 0 : index
    %20 = vector.load %arg8[%c0_16, %c0_17, %c0_18] : memref<1x17x128xf32, #tpu.memory_space<vmem>>, vector<1x17x128xf32>
    %21 = vector.shape_cast %20 : vector<1x17x128xf32> to vector<17x128xf32>
    %22 = vector.shape_cast %19 : vector<17x128xf32> to vector<1x17x128xf32>
    tpu.vector_store %arg8[%c0_16, %c0_17, %c0_18], %22 {strides = array<i32>} : memref<1x17x128xf32, #tpu.memory_space<vmem>>, vector<1x17x128xf32>,
    return
  }
  func.func @transform_0(%arg0: i32, %arg1: i32) -> (i32, i32, i32) {
    %c0_i32 = arith.constant 0 : i32
    %c0_i32_0 = arith.constant 0 : i32
    return %arg0, %c0_i32, %arg1 : i32, i32, i32
  }
  func.func @transform_1(%arg0: i32, %arg1: i32) -> (i32, i32) {
    %c0_i32 = arith.constant 0 : i32
    %c0_i32_0 = arith.constant 0 : i32
    %c0_i32_1 = arith.constant 0 : i32
    return %c0_i32, %c0_i32_0 : i32, i32
  }
  func.func @transform_2(%arg0: i32, %arg1: i32) -> (i32, i32) {
    %c0_i32 = arith.constant 0 : i32
    %c0_i32_0 = arith.constant 0 : i32
    %c0_i32_1 = arith.constant 0 : i32
    return %c0_i32, %c0_i32_0 : i32, i32
  }
  func.func @transform_3(%arg0: i32, %arg1: i32) -> (i32, i32) {
    %c0_i32 = arith.constant 0 : i32
    %c0_i32_0 = arith.constant 0 : i32
    %c0_i32_1 = arith.constant 0 : i32
    return %c0_i32, %c0_i32_0 : i32, i32
  }
  func.func @transform_4(%arg0: i32, %arg1: i32) -> (i32, i32) {
    %c0_i32 = arith.constant 0 : i32
    %c0_i32_0 = arith.constant 0 : i32
    %c0_i32_1 = arith.constant 0 : i32
    return %c0_i32, %c0_i32_0 : i32, i32
  }
  func.func @transform_5(%arg0: i32, %arg1: i32) -> (i32, i32, i32) {
    %c0_i32 = arith.constant 0 : i32
    %c0_i32_0 = arith.constant 0 : i32
    %c0_i32_1 = arith.constant 0 : i32
    return %arg0, %c0_i32, %c0_i32_0 : i32, i32, i32
  }
  func.func @transform_6(%arg0: i32, %arg1: i32) -> (i32, i32, i32) {
    %c0_i32 = arith.constant 0 : i32
    %c0_i32_0 = arith.constant 0 : i32
    return %arg0, %c0_i32, %arg1 : i32, i32, i32
  }
}

module attributes {stable_mosaic.version = 11 : i64} {
  func.func @_ctx_kernel(%arg0: i32, %arg1: i32, %arg2: memref<1x4x128xbf16, #tpu.memory_space<vmem>>, %arg3: memref<32x4xbf16, #tpu.memory_space<vmem>>, %arg4: memref<32x1xf32, #tpu.memory_space<vmem>>, %arg5: memref<17x32xbf16, #tpu.memory_space<vmem>>, %arg6: memref<1x32xf32, #tpu.memory_space<vmem>>, %arg7: memref<1x32xf32, #tpu.memory_space<vmem>>, %arg8: memref<1x17x32xf32, #tpu.memory_space<vmem>>, %arg9: memref<17x1xf32, #tpu.memory_space<vmem>>, %arg10: memref<17x1xf32, #tpu.memory_space<vmem>>, %arg11: memref<17x32xf32, #tpu.memory_space<vmem>>) attributes {dimension_semantics = [#tpu.dimension_semantics<parallel>, #tpu.dimension_semantics<arbitrary>], iteration_bounds = array<i64: 4, 2>, scalar_prefetch = 0 : i64, scratch_operands = 3 : i64, tpu.core_type = #tpu.core_type<tc>, window_params = [{transform_indices = @transform_0, window_bounds = array<i64: 1, 4, 128>}, {pipeline_mode = #tpu.pipeline_mode<synchronous>, transform_indices = @transform_1, window_bounds = array<i64: 32, 4>}, {pipeline_mode = #tpu.pipeline_mode<synchronous>, transform_indices = @transform_2, window_bounds = array<i64: 32, 1>}, {pipeline_mode = #tpu.pipeline_mode<synchronous>, transform_indices = @transform_3, window_bounds = array<i64: 17, 32>}, {pipeline_mode = #tpu.pipeline_mode<synchronous>, transform_indices = @transform_4, window_bounds = array<i64: 1, 32>}, {pipeline_mode = #tpu.pipeline_mode<synchronous>, transform_indices = @transform_5, window_bounds = array<i64: 1, 32>}, {transform_indices = @transform_6, window_bounds = array<i64: 1, 17, 32>}]} {
    %c0_i32 = arith.constant 0 : i32
    %0 = arith.cmpi eq, %arg1, %c0_i32 : i32
    %1 = arith.extui %0 : i1 to i32
    %c0_i32_0 = arith.constant 0 : i32
    %2 = arith.cmpi ne, %1, %c0_i32_0 : i32
    scf.if %2 {
      %cst_30 = arith.constant 0xFF800000 : f32
      %44 = vector.broadcast %cst_30 : f32 to vector<17x1xf32>
      %c0_31 = arith.constant 0 : index
      %c0_32 = arith.constant 0 : index
      %45 = vector.load %arg9[%c0_31, %c0_32] : memref<17x1xf32, #tpu.memory_space<vmem>>, vector<17x1xf32>
      tpu.vector_store %arg9[%c0_31, %c0_32], %44 {strides = array<i32>} : memref<17x1xf32, #tpu.memory_space<vmem>>, vector<17x1xf32>,
      %cst_33 = arith.constant 0.000000e+00 : f32
      %46 = vector.broadcast %cst_33 : f32 to vector<17x1xf32>
      %c0_34 = arith.constant 0 : index
      %c0_35 = arith.constant 0 : index
      %47 = vector.load %arg10[%c0_34, %c0_35] : memref<17x1xf32, #tpu.memory_space<vmem>>, vector<17x1xf32>
      tpu.vector_store %arg10[%c0_34, %c0_35], %46 {strides = array<i32>} : memref<17x1xf32, #tpu.memory_space<vmem>>, vector<17x1xf32>,
      %cst_36 = arith.constant 0.000000e+00 : f32
      %48 = vector.broadcast %cst_36 : f32 to vector<17x32xf32>
      %c0_37 = arith.constant 0 : index
      %c0_38 = arith.constant 0 : index
      %49 = vector.load %arg11[%c0_37, %c0_38] : memref<17x32xf32, #tpu.memory_space<vmem>>, vector<17x32xf32>
      tpu.vector_store %arg11[%c0_37, %c0_38], %48 {strides = array<i32>} : memref<17x32xf32, #tpu.memory_space<vmem>>, vector<17x32xf32>,
    } else {
    }
    %c0 = arith.constant 0 : index
    %c0_1 = arith.constant 0 : index
    %c0_2 = arith.constant 0 : index
    %3 = vector.load %arg2[%c0, %c0_1, %c0_2] : memref<1x4x128xbf16, #tpu.memory_space<vmem>>, vector<1x4x128xbf16>
    %4 = vector.shape_cast %3 : vector<1x4x128xbf16> to vector<4x128xbf16>
    %c0_3 = arith.constant 0 : index
    %c0_4 = arith.constant 0 : index
    %5 = vector.load %arg3[%c0_3, %c0_4] : memref<32x4xbf16, #tpu.memory_space<vmem>>, vector<32x4xbf16>
    %cst = arith.constant dense<0.000000e+00> : vector<32x128xf32>
    %6 = tpu.matmul %5, %4, %cst {dimension_numbers = #tpu.dot_dimension_numbers<[1], [0], [0], [1], [0, 0, 1, 1], [], []>} : vector<32x4xbf16>, vector<4x128xbf16>, vector<32x128xf32> -> vector<32x128xf32>
    %c0_5 = arith.constant 0 : index
    %c0_6 = arith.constant 0 : index
    %7 = vector.load %arg4[%c0_5, %c0_6] : memref<32x1xf32, #tpu.memory_space<vmem>>, vector<32x1xf32>
    %8 = vector.broadcast %7 : vector<32x1xf32> to vector<32x128xf32>
    %9 = arith.addf %6, %8 : vector<32x128xf32>
    %cst_7 = arith.constant 0.000000e+00 : f32
    %10 = vector.broadcast %cst_7 : f32 to vector<32x128xf32>
    %11 = arith.maximumf %9, %10 : vector<32x128xf32>
    %12 = arith.truncf %11 : vector<32x128xf32> to vector<32x128xbf16>
    %c0_8 = arith.constant 0 : index
    %c0_9 = arith.constant 0 : index
    %13 = vector.load %arg5[%c0_8, %c0_9] : memref<17x32xbf16, #tpu.memory_space<vmem>>, vector<17x32xbf16>
    %cst_10 = arith.constant dense<0.000000e+00> : vector<17x128xf32>
    %14 = tpu.matmul %13, %12, %cst_10 {dimension_numbers = #tpu.dot_dimension_numbers<[1], [0], [0], [1], [0, 0, 1, 1], [], []>} : vector<17x32xbf16>, vector<32x128xbf16>, vector<17x128xf32> -> vector<17x128xf32>
    %cst_11 = arith.constant 0.176776692 : f32
    %15 = vector.broadcast %cst_11 : f32 to vector<17x128xf32>
    %16 = arith.mulf %14, %15 : vector<17x128xf32>
    %c0_12 = arith.constant 0 : index
    %c0_13 = arith.constant 0 : index
    %17 = vector.load %arg9[%c0_12, %c0_13] : memref<17x1xf32, #tpu.memory_space<vmem>>, vector<17x1xf32>
    %cst_14 = arith.constant dense<0xFF800000> : vector<17xf32>
    %18 = vector.multi_reduction <maximumf>, %16, %cst_14 [1] : vector<17x128xf32> to vector<17xf32>
    %19 = vector.shape_cast %18 : vector<17xf32> to vector<17x1xf32>
    %20 = arith.maximumf %17, %19 : vector<17x1xf32>
    %c0_15 = arith.constant 0 : index
    %c0_16 = arith.constant 0 : index
    %21 = vector.load %arg9[%c0_15, %c0_16] : memref<17x1xf32, #tpu.memory_space<vmem>>, vector<17x1xf32>
    %22 = arith.subf %21, %20 : vector<17x1xf32>
    %23 = math.exp %22 : vector<17x1xf32>
    %24 = vector.broadcast %20 : vector<17x1xf32> to vector<17x128xf32>
    %25 = arith.subf %16, %24 : vector<17x128xf32>
    %26 = math.exp %25 : vector<17x128xf32>
    %c0_17 = arith.constant 0 : index
    %c0_18 = arith.constant 0 : index
    %27 = vector.load %arg10[%c0_17, %c0_18] : memref<17x1xf32, #tpu.memory_space<vmem>>, vector<17x1xf32>
    %28 = arith.mulf %23, %27 : vector<17x1xf32>
    %cst_19 = arith.constant dense<0.000000e+00> : vector<17xf32>
    %29 = vector.multi_reduction <add>, %26, %cst_19 [1] : vector<17x128xf32> to vector<17xf32>
    %30 = vector.shape_cast %29 : vector<17xf32> to vector<17x1xf32>
    %31 = arith.addf %28, %30 : vector<17x1xf32>
    %c0_20 = arith.constant 0 : index
    %c0_21 = arith.constant 0 : index
    %32 = vector.load %arg10[%c0_20, %c0_21] : memref<17x1xf32, #tpu.memory_space<vmem>>, vector<17x1xf32>
    tpu.vector_store %arg10[%c0_20, %c0_21], %31 {strides = array<i32>} : memref<17x1xf32, #tpu.memory_space<vmem>>, vector<17x1xf32>,
    %33 = arith.truncf %26 : vector<17x128xf32> to vector<17x128xbf16>
    %cst_22 = arith.constant dense<0.000000e+00> : vector<17x32xf32>
    %34 = tpu.matmul %33, %12, %cst_22 {dimension_numbers = #tpu.dot_dimension_numbers<[1], [1], [0], [0], [0, 0, 1, 0], [], []>} : vector<17x128xbf16>, vector<32x128xbf16>, vector<17x32xf32> -> vector<17x32xf32>
    %c0_23 = arith.constant 0 : index
    %c0_24 = arith.constant 0 : index
    %35 = vector.load %arg11[%c0_23, %c0_24] : memref<17x32xf32, #tpu.memory_space<vmem>>, vector<17x32xf32>
    %36 = vector.broadcast %23 : vector<17x1xf32> to vector<17x32xf32>
    %37 = arith.mulf %36, %35 : vector<17x32xf32>
    %38 = arith.addf %37, %34 : vector<17x32xf32>
    %c0_25 = arith.constant 0 : index
    %c0_26 = arith.constant 0 : index
    %39 = vector.load %arg11[%c0_25, %c0_26] : memref<17x32xf32, #tpu.memory_space<vmem>>, vector<17x32xf32>
    tpu.vector_store %arg11[%c0_25, %c0_26], %38 {strides = array<i32>} : memref<17x32xf32, #tpu.memory_space<vmem>>, vector<17x32xf32>,
    %c0_27 = arith.constant 0 : index
    %c0_28 = arith.constant 0 : index
    %40 = vector.load %arg9[%c0_27, %c0_28] : memref<17x1xf32, #tpu.memory_space<vmem>>, vector<17x1xf32>
    tpu.vector_store %arg9[%c0_27, %c0_28], %20 {strides = array<i32>} : memref<17x1xf32, #tpu.memory_space<vmem>>, vector<17x1xf32>,
    %c1_i32 = arith.constant 1 : i32
    %41 = arith.cmpi eq, %arg1, %c1_i32 : i32
    %42 = arith.extui %41 : i1 to i32
    %c0_i32_29 = arith.constant 0 : i32
    %43 = arith.cmpi ne, %42, %c0_i32_29 : i32
    scf.if %43 {
      %c0_30 = arith.constant 0 : index
      %c0_31 = arith.constant 0 : index
      %44 = vector.load %arg10[%c0_30, %c0_31] : memref<17x1xf32, #tpu.memory_space<vmem>>, vector<17x1xf32>
      %45 = tpu.reciprocal %44 {approx = true} : vector<17x1xf32> -> vector<17x1xf32>
      %c0_32 = arith.constant 0 : index
      %c0_33 = arith.constant 0 : index
      %46 = vector.load %arg11[%c0_32, %c0_33] : memref<17x32xf32, #tpu.memory_space<vmem>>, vector<17x32xf32>
      %47 = vector.broadcast %45 : vector<17x1xf32> to vector<17x32xf32>
      %48 = arith.mulf %46, %47 : vector<17x32xf32>
      %cst_34 = arith.constant dense<0.000000e+00> : vector<17xf32>
      %49 = vector.multi_reduction <add>, %48, %cst_34 [1] : vector<17x32xf32> to vector<17xf32>
      %50 = vector.shape_cast %49 : vector<17xf32> to vector<17x1xf32>
      %cst_35 = arith.constant 3.200000e+01 : f32
      %51 = vector.broadcast %cst_35 : f32 to vector<17x1xf32>
      %52 = arith.divf %50, %51 : vector<17x1xf32>
      %53 = vector.broadcast %52 : vector<17x1xf32> to vector<17x32xf32>
      %54 = arith.subf %48, %53 : vector<17x32xf32>
      %55 = vector.broadcast %52 : vector<17x1xf32> to vector<17x32xf32>
      %56 = arith.subf %48, %55 : vector<17x32xf32>
      %57 = arith.mulf %54, %56 : vector<17x32xf32>
      %cst_36 = arith.constant dense<0.000000e+00> : vector<17xf32>
      %58 = vector.multi_reduction <add>, %57, %cst_36 [1] : vector<17x32xf32> to vector<17xf32>
      %59 = vector.shape_cast %58 : vector<17xf32> to vector<17x1xf32>
      %cst_37 = arith.constant 3.200000e+01 : f32
      %60 = vector.broadcast %cst_37 : f32 to vector<17x1xf32>
      %61 = arith.divf %59, %60 : vector<17x1xf32>
      %c0_38 = arith.constant 0 : index
      %c0_39 = arith.constant 0 : index
      %62 = vector.load %arg6[%c0_38, %c0_39] : memref<1x32xf32, #tpu.memory_space<vmem>>, vector<1x32xf32>
      %63 = vector.broadcast %52 : vector<17x1xf32> to vector<17x32xf32>
      %64 = arith.subf %48, %63 : vector<17x32xf32>
      %65 = vector.broadcast %62 : vector<1x32xf32> to vector<17x32xf32>
      %66 = arith.mulf %65, %64 : vector<17x32xf32>
      %cst_40 = arith.constant 9.99999974E-6 : f32
      %67 = vector.broadcast %cst_40 : f32 to vector<17x1xf32>
      %68 = arith.addf %61, %67 : vector<17x1xf32>
      %69 = math.rsqrt %68 : vector<17x1xf32>
      %70 = vector.broadcast %69 : vector<17x1xf32> to vector<17x32xf32>
      %71 = arith.mulf %66, %70 : vector<17x32xf32>
      %c0_41 = arith.constant 0 : index
      %c0_42 = arith.constant 0 : index
      %72 = vector.load %arg7[%c0_41, %c0_42] : memref<1x32xf32, #tpu.memory_space<vmem>>, vector<1x32xf32>
      %73 = vector.broadcast %72 : vector<1x32xf32> to vector<17x32xf32>
      %74 = arith.addf %71, %73 : vector<17x32xf32>
      %c0_43 = arith.constant 0 : index
      %c0_44 = arith.constant 0 : index
      %c0_45 = arith.constant 0 : index
      %75 = vector.load %arg8[%c0_43, %c0_44, %c0_45] : memref<1x17x32xf32, #tpu.memory_space<vmem>>, vector<1x17x32xf32>
      %76 = vector.shape_cast %75 : vector<1x17x32xf32> to vector<17x32xf32>
      %77 = vector.shape_cast %74 : vector<17x32xf32> to vector<1x17x32xf32>
      tpu.vector_store %arg8[%c0_43, %c0_44, %c0_45], %77 {strides = array<i32>} : memref<1x17x32xf32, #tpu.memory_space<vmem>>, vector<1x17x32xf32>,
    } else {
    }
    return
  }
  func.func @transform_0(%arg0: i32, %arg1: i32) -> (i32, i32, i32) {
    %c0_i32 = arith.constant 0 : i32
    %c0_i32_0 = arith.constant 0 : i32
    return %arg0, %c0_i32, %arg1 : i32, i32, i32
  }
  func.func @transform_1(%arg0: i32, %arg1: i32) -> (i32, i32) {
    %c0_i32 = arith.constant 0 : i32
    %c0_i32_0 = arith.constant 0 : i32
    %c0_i32_1 = arith.constant 0 : i32
    return %c0_i32, %c0_i32_0 : i32, i32
  }
  func.func @transform_2(%arg0: i32, %arg1: i32) -> (i32, i32) {
    %c0_i32 = arith.constant 0 : i32
    %c0_i32_0 = arith.constant 0 : i32
    %c0_i32_1 = arith.constant 0 : i32
    return %c0_i32, %c0_i32_0 : i32, i32
  }
  func.func @transform_3(%arg0: i32, %arg1: i32) -> (i32, i32) {
    %c0_i32 = arith.constant 0 : i32
    %c0_i32_0 = arith.constant 0 : i32
    %c0_i32_1 = arith.constant 0 : i32
    return %c0_i32, %c0_i32_0 : i32, i32
  }
  func.func @transform_4(%arg0: i32, %arg1: i32) -> (i32, i32) {
    %c0_i32 = arith.constant 0 : i32
    %c0_i32_0 = arith.constant 0 : i32
    %c0_i32_1 = arith.constant 0 : i32
    return %c0_i32, %c0_i32_0 : i32, i32
  }
  func.func @transform_5(%arg0: i32, %arg1: i32) -> (i32, i32) {
    %c0_i32 = arith.constant 0 : i32
    %c0_i32_0 = arith.constant 0 : i32
    %c0_i32_1 = arith.constant 0 : i32
    return %c0_i32, %c0_i32_0 : i32, i32
  }
  func.func @transform_6(%arg0: i32, %arg1: i32) -> (i32, i32, i32) {
    %c0_i32 = arith.constant 0 : i32
    %c0_i32_0 = arith.constant 0 : i32
    %c0_i32_1 = arith.constant 0 : i32
    return %arg0, %c0_i32, %c0_i32_0 : i32, i32, i32
  }
}

</mosaic_0001>

<bundles_post_ra>
// kernel: local_ca_pose_forward.3
= control target key start
LH: loop header
LB: loop body
LE: loop exit
PB: predicated region body
PF: predicated region fallthrough
CT: control target
= control target key end

     0   :  { %s898_s21 = smov 0   ;;  %s900_s22 = smov 0   ;;  %s1039_s0 = inlined_call_operand.vmem [shape: bf16[4,4,256], index: 0, kind: input, shape index: {}]   ;;  %s1040_s1 = inlined_call_operand.vmem [shape: bf16[32,4], index: 1, kind: input, shape index: {}]   ;;  %s1041_s2 = inlined_call_operand.vmem [shape: f32[32,1], index: 2, kind: input, shape index: {}]   ;;  %s1042_s3 = inlined_call_operand.vmem [shape: bf16[17,32], index: 3, kind: input, shape index: {}]   ;;  %s1043_s4 = inlined_call_operand.vmem [shape: f32[17,1], index: 4, kind: input, shape index: {}]   ;;  %s1044_s5 = inlined_call_operand.vmem [shape: f32[4,17,32], index: 5, kind: input, shape index: {}]   ;;  %s1045_s6 = inlined_call_operand.vmem [shape: f32[4,17,256], index: 6, kind: output, shape index: {}]  }
   0x1   :  { %s902_s23 = smov 0   ;;  %s904_s24 = smov 0  }
   0x2   :  { %s906_s25 = smov 0   ;;  %s908_s26 = smov 0  }
   0x3   :  { %s910_s27 = smov 0  }
   0x4 LB: > { %s25_s28 = sadd.s32 1, %s852_s25  ;;  %s28_s29 = sadd.s32 1, %s856_s26  ;;  %s860_s27 = sphi %s910_s27, %s16_s27   ;;  %s856_s26 = sphi %s908_s26, %s1052_s26   ;;  %s852_s25 = sphi %s906_s25, %s1051_s25   ;;  %s848_s24 = sphi %s904_s24, %s1050_s24   ;;  %s844_s23 = sphi %s902_s23, %s1049_s23   ;;  %s840_s22 = sphi %s900_s22, %s1048_s22   ;;  %s836_s21 = sphi %s898_s21, %s1047_s21  }
   0x5   : > { %p26_p0 = scmp.ge.s32.totalorder %s25_s28, 2  ;;  %s679_s30 = sadd.s32 4294967295, %s860_s27  }
   0x6   : > { %p185_p1 = scmp.ne.s32.totalorder %s840_s22, %s836_s21  ;;  %p186_p2 = scmp.eq.s32.totalorder %s679_s30, 7 }
   0x7   : > { %s1054_s28 = smov (%p26_p0, %s25_s28), 0  ;;  %s1056_s29 = smov (!%p26_p0, %s28_s29), %s856_s26 }
   0x8   : > { %s171_s7 = ssub.s32 %s852_s25, %s1054_s28  ;;  %p30_p3 = scmp.ge.s32.totalorder %s1056_s29, 4 }
   0x9   : > { %p683_p4 = scmp.ge.s32.totalorder %s860_s27, 1  ;;  %p944_p5 = por %p186_p2, %p185_p1 }
   0xa   : > { %p241_p6 = scmp.lt.s32.totalorder %s860_s27, 9  ;;  %s1058_s29 = smov (%p30_p3, %s1056_s29), 0 }
   0xb   : > { %s170_s9 = ssub.s32 %s856_s26, %s1058_s29  ;;  %s175_s11 = sadd.s32 1, %s840_s22 }
   0xc   : > { %p242_p7 = pnand %p683_p4, %p241_p6  ;;  %s172_s10 = sor.u32 %s171_s7, %s170_s9 }
   0xd   : > { %p173_p8 = scmp.eq.s32.totalorder %s172_s10, 0  ;;  %p278_p9 = scmp.lt.s32.totalorder (!%p242_p7), %s848_s24, 3  ;;  %v802_v0 = vld [vmem:[%s1040_s1] sm:$0xff] (!%p242_p7)   ;;  %vm331_vm0 = vcmask (!%p242_p7), 31744   ;;  %v862_v2 = vmov (!%p242_p7), 0   ;;  %v299_v3 = vld [vmem:[%s1041_s2 + $0x10] sm:$0xff] (!%p242_p7) }
   0xe   : > { %245 = sbr.rel (%p242_p7) target bundleno = 489 (0x1e9), region = 44  ;;  %p280_p10 = scmp.lt.s32.totalorder (!%p242_p7), %s844_s23, 1  ;;  %713 = vmatprep.mubr.msk.bf16.mxu0 (!%p242_p7), %vm331_vm0, %v802_v0  ;;  %v297_v1 = vld [vmem:[%s1041_s2] sm:$0xff] (!%p242_p7)  ;;  %800 = vset.pattern.permute.xlu0 (!%p242_p7), %v862_v2  ;;  %v298_v4 = vld [vmem:[%s1041_s2 + $0x8] sm:$0xff] (!%p242_p7)  ;;  %v300_v5 = vld [vmem:[%s1041_s2 + $0x18] sm:$0xff] (!%p242_p7)  ;;  %vm338_vm1 = vcmask (!%p242_p7), 1041408  }
   0xf   : > { %s955_s12 = scalar_select %p173_p8, %s840_s22, %s175_s11  }
  0x10   : > { %801 = vset.pattern.permute.xlu1 (!%p242_p7), %v862_v2  ;;  %303 = vperm.xlu0 (!%p242_p7), %800, %v297_v1   ;;  %v803_v8 = vld [vmem:[%s1040_s1 + $0x8] sm:$0xff] (!%p242_p7)   ;;  %v400_v9 = vld [vmem:[%s1043_s4] sm:$0xff] (!%p242_p7)  ;;  %v402_v11 = vld [vmem:[%s1043_s4 + $0x10] sm:$0x1] (!%p242_p7)  ;;  %vm426_vm2 = vcmask (!%p242_p7), 261120  }
  0x11   : > { %313 = vperm.xlu1 (!%p242_p7), %801, %v299_v3   ;;  %v401_v10 = vld [vmem:[%s1043_s4 + $0x8] sm:$0xff] (!%p242_p7)  ;;  %v804_v14 = vld [vmem:[%s1042_s3] sm:$0xff] (!%p242_p7)  }
  0x12   : > { %v805_v36 = vld [vmem:[%s1042_s3 + $0x8] ss:$0 sps:$4 sm:$0x11] (!%p242_p7)  }
  0x14   : > { %308 = vperm.xlu0 (!%p242_p7), %800, %v298_v4  }
  0x15   : > { %s963_s15 = scalar_select %p278_p9, %s848_s24, 3  ;;  %318 = vperm.xlu1 %801, %v300_v5  }
  0x16   : > { %s281_s18 = scalar_select %p280_p10, %s844_s23, 1 }
  0x17   : > { %s684_s30 = sshll.u32 %s963_s15, 1 }
  0x18   : > { %s283_s10 = sadd.s32 %s684_s30, %s281_s18  ;;  %405 = vperm.xlu0 %800, %v400_v9   ;;  %s275_s30 = sand.u32 1, %s836_s21  }
  0x19   : > { %s685_s14 = sshll.u32 %s283_s10, 1  ;;  %410 = vperm.xlu1 %801, %v401_v10   ;;  %s740_s9 = smul.u32 24, %s275_s30 }
  0x1a   : > { %s285_s19 = scalar_lea.vmem %s1039_s0, %s685_s14  ;;  %s741_s14 = smul.u32 24, %s963_s15 }
  0x1b   : > { %v292_v6 = vld [vmem:[%s285_s19] sm:$0x3]  ;;  %s277_s10 = scalar_lea.vmem [#allocation2], %s740_s9  ;;  %s742_s21 = smul.u32 (%p944_p5), 6, %s848_s24 }
  0x1c   : > { %739 = vmatprep.subr.msk.bf16.mxu0 %vm338_vm1, %v292_v6  ;;  %v340_v7 = vsel %vm338_vm1, %v292_v6, 0  ;;  %415 = vperm.xlu0 %800, %v402_v11   ;;  %s290_s19 = scalar_lea.vmem %s1044_s5, %s741_s14 }
  0x1d   : > { %712 = vmatpush3.bf16.msra.mxu0 %v340_v7  ;;  %v481_v12 = vld [vmem:[%s290_s19] sm:$0xff]  ;;  %v482_v13 = vld [vmem:[%s290_s19 + $0x8] sm:$0xff]  ;;  %v483_v34 = vld [vmem:[%s290_s19 + $0x10] sm:$0x1]  ;;  %s554_s11 = sadd.s32 (%p944_p5), %s844_s23, %s742_s21 }
  0x1e   : > { %v484_v15 = vpack.c.bf16 %v482_v13, %v481_v12  ;;  %v485_v35 = vpack.c.bf16 %v483_v34, %v483_v34  ;;  %s697_s13 = sshll.u32 (%p944_p5), %s554_s11, 3 }
  0x1f   : > { %s556_s17 = scalar_lea.vmem (%p944_p5), %s1045_s6, %s697_s13 }
  0x20   : > { %714 = vmatmul.mubr.msk.bf16.vlgmr.msra.gmra.mrb[0].mxu0 %vm331_vm0, %v803_v8  ;;  %729 = vmatprep.mubr.msk.bf16.mxu1 %vm426_vm2, %v484_v15 }
  0x21   : > { %721 = vmatprep.mubr.msk.bf16.mxu0 %vm426_vm2, %v804_v14 }
  0x8f   : > { %v304_v17 = vpop.permute.xlu0 %303 }
  0x90   : > { %v314_v16 = vpop.permute.xlu1 %313 }
  0x93   : > { %v309_v24 = vpop.permute.xlu0 %308 }
  0x94   : > { %v319_v21 = vpop.permute.xlu1 %318 }
  0x97   : > { %v406_v37 = vpop.permute.xlu0 %405 }
  0x98   : > { %v411_v39 = vpop.permute.xlu1 %410 }
  0x9b   : > { %v416_v38 = vpop.permute.xlu0 %415 }
  0xf3   : > { %v715_v18 = vpop.f32.mrb[0].mxu0 }
  0xf4   : > { %v385_v19 = vadd.f32 %v715_v18, %v314_v16  ;;  %v376_v20 = vpop.f32.mrb[1].mxu0 }
  0xf5   : > { %v377_v22 = vadd.f32 %v376_v20, %v304_v17  ;;  %v716_v23 = vpop.f32.mrb[2].mxu0 }
  0xf6   : > { %v388_v25 = vadd.f32 %v716_v23, %v319_v21  ;;  %v379_v26 = vpop.f32.mrb[3].mxu0  ;;  %v393_v28 = vmax.f32 %v385_v19, 0.0 }
  0xf7   : > { %v380_v27 = vadd.f32 %v379_v26, %v309_v24  ;;  %v391_v30 = vmax.f32 %v377_v22, 0.0 }
  0xf8   : > { %v394_v29 = vmax.f32 %v388_v25, 0.0 }
  0xf9   : > { %v392_v31 = vmax.f32 %v380_v27, 0.0 }
  0xfa   : > { %v396_v32 = vpack.c.bf16 %v394_v29, %v393_v28 }
  0xfb   : > { %v395_v33 = vpack.c.bf16 %v392_v31, %v391_v30 }
  0xfd   : > { %717 = vmatprep.subr.bf16.mxu0 %v395_v33  ;;  %725 = vmatprep.subr.bf16.mxu1 %v395_v33 }
  0xfe   : > { %718 = vmatpush3.bf16.msra.mxu0 %v395_v33  ;;  %726 = vmatpush3.bf16.msra.mxu1 %v395_v33 }
  0xff   : > { %719 = vmatprep.subr.bf16.mxu0 %v396_v32  ;;  %727 = vmatprep.subr.bf16.mxu1 %v396_v32 }
 0x102   : > { %720 = vmatpush3.bf16.msra.mxu0 %v396_v32  ;;  %728 = vmatpush3.bf16.msra.mxu1 %v396_v32 }
 0x105   : > { %722 = vmatmul.mubr.msk.bf16.vlgmr.msra.gmra.mrb[4].mxu0 %vm426_vm2, %v805_v36  ;;  %730 = vmatmul.mubr.msk.bf16.vlgmr.msra.gmra.mrb[0].mxu1 %vm426_vm2, %v485_v35 }
 0x1d8   : > { %v723_v40 = vpop.f32.mrb[4].mxu0  ;;  %v731_v41 = vpop.f32.mrb[0].mxu1 }
 0x1d9   : > { %v476_v42 = vadd.f32 %v723_v40, %v416_v38  ;;  %v467_v43 = vpop.f32.mrb[5].mxu0  ;;  %v526_v44 = vpop.f32.mrb[1].mxu1 }
 0x1da   : > { %v468_v45 = vadd.f32 %v467_v43, %v406_v37  ;;  %v724_v46 = vpop.f32.mrb[6].mxu0  ;;  %v732_v47 = vpop.f32.mrb[2].mxu1  ;;  %552 = sbr.rel (!%p944_p5) target bundleno = 489 (0x1e9), region = 48 }
 0x1db   : > { %v542_v48 = vadd.f32 %v731_v41, %v476_v42  ;;  %v470_v49 = vpop.f32.mrb[7].mxu0  ;;  %v529_v50 = vpop.f32.mrb[3].mxu1 }
 0x1dc   : > { %v540_v51 = vadd.f32 %v526_v44, %v468_v45  ;;  %v471_v52 = vadd.f32 %v470_v49, %v411_v39 }
 0x1dd   : > { %545 = vst [vmem:[%s277_s10 + $0x10] sm:$0x1] %v542_v48 }
 0x1de   : > { %543 = vst [vmem:[%s277_s10] sm:$0xff] %v540_v51  ;;  %v541_v53 = vadd.f32 %v529_v50, %v471_v52 }
 0x1e0   : > { %544 = vst [vmem:[%s277_s10 + $0x8] sm:$0xff] %v541_v53 }
 0x1e4   : > { %v592_v56 = vld [vmem:[%s277_s10 + $0x10] sm:$0xff] }
 0x1e5   : > { %v588_v54 = vld [vmem:[%s277_s10] sm:$0xff]  ;;  %593 = vst [vmem:[%s556_s17 + $0x20] sm:$0xff] %v592_v56 }
 0x1e6   : > { %589 = vst [vmem:[%s556_s17] sm:$0xff] %v588_v54 }
 0x1e7   : > { %v590_v55 = vld [vmem:[%s277_s10 + $0x8] sm:$0xff] }
 0x1e8   : > { %591 = vst [vmem:[%s556_s17 + $0x10] sm:$0xff] %v590_v55 }
 0x1e9 PF: > { %s16_s27 = sadd.s32 1, %s860_s27   ;;  %s1047_s21 = smov %s840_s22 }
 0x1ea   : > { %p13_p11 = scmp.ge.s32.totalorder %s16_s27, 10   ;;  %s1048_s22 = smov %s955_s12 }
 0x1eb   : > { %s1049_s23 = smov %s852_s25  ;;  %s1050_s24 = smov %s856_s26 }
 0x1ec   : > { %s1051_s25 = smov %s1054_s28  ;;  %s1052_s26 = smov %s1058_s29 }
 0x1ed   :  { %15 = sbr.rel (!%p13_p11) target bundleno = 4 (0x4), region = 115 }

// kernel: local_ca_pose_forward.2
= control target key start
LH: loop header
LB: loop body
LE: loop exit
PB: predicated region body
PF: predicated region fallthrough
CT: control target
= control target key end

     0   :  { %s994_s21 = smov 0   ;;  %s996_s22 = smov 0   ;;  %s1108_s0 = inlined_call_operand.vmem [shape: bf16[4,4,256], index: 0, kind: input, shape index: {}]   ;;  %s1109_s1 = inlined_call_operand.vmem [shape: bf16[32,4], index: 1, kind: input, shape index: {}]   ;;  %s1110_s2 = inlined_call_operand.vmem [shape: f32[32,1], index: 2, kind: input, shape index: {}]   ;;  %s1111_s3 = inlined_call_operand.vmem [shape: bf16[17,32], index: 3, kind: input, shape index: {}]   ;;  %s1112_s4 = inlined_call_operand.vmem [shape: f32[1,32], index: 4, kind: input, shape index: {}]   ;;  %s1113_s5 = inlined_call_operand.vmem [shape: f32[1,32], index: 5, kind: input, shape index: {}]   ;;  %s1114_s6 = inlined_call_operand.vmem [shape: f32[4,17,32], index: 6, kind: output, shape index: {}]  }
   0x1   :  { %s998_s23 = smov 0   ;;  %s1000_s24 = smov 0  }
   0x2   :  { %s1002_s25 = smov 0  }
   0x3 LB: > { %s25_s26 = sadd.s32 1, %s945_s23  ;;  %s28_s27 = sadd.s32 1, %s949_s24  ;;  %s953_s25 = sphi %s1002_s25, %s16_s25   ;;  %s949_s24 = sphi %s1000_s24, %s1118_s24   ;;  %s945_s23 = sphi %s998_s23, %s1117_s23   ;;  %s941_s22 = sphi %s996_s22, %s1116_s22   ;;  %s937_s21 = sphi %s994_s21, %s1115_s21  }
   0x4   : > { %p26_p0 = scmp.ge.s32.totalorder %s25_s26, 2  ;;  %p786_p1 = scmp.ge.s32.totalorder %s953_s25, 1 }
   0x5   : > { %p229_p2 = scmp.lt.s32.totalorder %s953_s25, 9 }
   0x6   : > { %s1120_s26 = smov (%p26_p0, %s25_s26), 0  ;;  %s1122_s27 = smov (!%p26_p0, %s28_s27), %s949_s24 }
   0x7   : > { %p230_p3 = pnand %p786_p1, %p229_p2  ;;  %p30_p4 = scmp.ge.s32.totalorder %s1122_s27, 4 }
   0x8   : > { %p262_p5 = scmp.lt.s32.totalorder (!%p230_p3), %s941_s22, 3  ;;  %p264_p6 = scmp.lt.s32.totalorder (!%p230_p3), %s937_s21, 1 }
   0x9   : > { %s1124_s27 = smov (%p30_p4, %s1122_s27), 0  ;;  %233 = sbr.rel (%p230_p3) target bundleno = 1373 (0x55d), region = 44 }
   0xa   : > { %p790_p7 = scmp.ne.s32.totalorder (!%p230_p3), %s937_s21, 0 }
  0x10   : > { %s1126_s22 = smov (!%p262_p5, %s941_s22), 3  ;;  %279 = sbr.rel (%p790_p7) target bundleno = 24 (0x18), region = 48 }
  0x11   : > { %s265_s28 = scalar_select %p264_p6, %s937_s21, 1 }
  0x12   : > { %s787_s29 = sshll.u32 %s1126_s22, 1  ;;  %s838_s30 = smul.u32 24, %s1126_s22  ;;  %vm280_vm0 = vcmask (!%p790_p7), 7168   ;;  %vm283_vm1 = vcmask (!%p790_p7), 0   ;;  %v955_v0 = vmov (!%p790_p7), -inf   ;;  %v956_v1 = vmov (!%p790_p7), 0.0  }
  0x13   : > { %s267_s7 = sadd.s32 %s787_s29, %s265_s28  ;;  %281 = vst.msk [vmem:[#allocation2] sm:$0xff] (!%p790_p7), %vm280_vm0, %v955_v0  ;;  %282 = vst.msk [vmem:[#allocation2 + $0x8] sm:$0xff] (!%p790_p7), %vm280_vm0, %v955_v0  ;;  %vm288_vm2 = vcmask (!%p790_p7), 261120   ;;  %vm291_vm3 = vcmask (!%p790_p7), 253952  }
  0x14   : > { %s788_s8 = sshll.u32 %s267_s7, 1  ;;  %s1031_s11 = scalar_lea.vmem %s1114_s6, %s838_s30  ;;  %284 = vst.msk [vmem:[#allocation2 + $0x10] sm:$0x1] (!%p790_p7), %vm283_vm1, %v955_v0  ;;  %287 = vst.msk [vmem:[#allocation3 + $0x10] sm:$0x1] (!%p790_p7), %vm283_vm1, %v956_v1 }
  0x15   : > { %s269_s14 = scalar_lea.vmem %s1108_s0, %s788_s8  ;;  %285 = vst.msk [vmem:[#allocation3] sm:$0xff] (!%p790_p7), %vm280_vm0, %v956_v1  ;;  %286 = vst.msk [vmem:[#allocation3 + $0x8] sm:$0xff] (!%p790_p7), %vm280_vm0, %v956_v1 }
  0x16   : > { %289 = vst.msk [vmem:[#allocation4] sm:$0xff] (!%p790_p7), %vm288_vm2, %v956_v1  ;;  %290 = vst.msk [vmem:[#allocation4 + $0x8] sm:$0xff] (!%p790_p7), %vm288_vm2, %v956_v1 }
  0x17   : > { %292 = vst.msk [vmem:[#allocation4 + $0x10] sm:$0x1] %vm291_vm3, %v956_v1 }
  0x18 PF: > { %v293_v2 = vld [vmem:[%s269_s14] sm:$0x3]  ;;  %vm339_vm4 = vcmask 1041408   ;;  %vm332_vm5 = vcmask 31744   ;;  %v886_v5 = vld [vmem:[%s1109_s1 + $0x8] sm:$0xff]   ;;  %v957_v7 = vmov 0  }
  0x19   : > { %v885_v3 = vld [vmem:[%s1109_s1] sm:$0xff]   ;;  %837 = vmatprep.subr.msk.bf16.mxu1 %vm339_vm4, %v293_v2  ;;  %v341_v4 = vsel %vm339_vm4, %v293_v2, 0  ;;  %883 = vset.pattern.permute.xlu0 %v957_v7  ;;  %v300_v8 = vld [vmem:[%s1110_s2 + $0x10] sm:$0xff]  ;;  %v299_v9 = vld [vmem:[%s1110_s2 + $0x8] sm:$0xff]  ;;  %vm409_vm6 = vcmask 261120   ;;  %vm474_vm7 = vcmask 1040384  }
  0x1a   : > { %816 = vmatpush3.bf16.msra.mxu1 %v341_v4  ;;  %817 = vmatprep.mubr.msk.bf16.mxu1 %vm332_vm5, %v885_v3  ;;  %v298_v6 = vld [vmem:[%s1110_s2] sm:$0xff]  ;;  %v301_v10 = vld [vmem:[%s1110_s2 + $0x18] sm:$0xff]  ;;  %v888_v30 = vld [vmem:[%s1111_s3 + $0x8] ss:$0 sps:$4 sm:$0x11]   ;;  %vm530_vm8 = vcmask 7168  }
  0x1b   : > { %884 = vset.pattern.permute.xlu1 %v957_v7  ;;  %304 = vperm.xlu0 %883, %v298_v6   ;;  %v887_v11 = vld [vmem:[%s1111_s3] sm:$0xff]   ;;  %v468_v41 = vld [vmem:[#allocation2 + $0x8] sm:$0xff]  ;;  %vm533_vm9 = vcmask 0   ;;  %vm611_vm10 = vcmask 253952   ;;  %p799_p8 = scmp.ne.s32.totalorder %s937_s21, 1 }
  0x1c   : > { %314 = vperm.xlu1 %884, %v300_v8   ;;  %v467_v39 = vld [vmem:[#allocation2] sm:$0xff]  ;;  %v469_v44 = vld [vmem:[#allocation2 + $0x10] sm:$0x1] }
  0x1d   : > { %818 = vmatmul.mubr.msk.bf16.vlgmr.msra.gmra.mrb[0].mxu1 %vm332_vm5, %v886_v5  ;;  %v514_v8 = vld [vmem:[#allocation3] sm:$0xff] }
  0x1e   : > { %825 = vmatprep.mubr.msk.bf16.mxu1 %vm409_vm6, %v887_v11 }
  0x1f   : > { %309 = vperm.xlu0 %883, %v299_v9  }
  0x20   : > { %319 = vperm.xlu1 %884, %v301_v10   ;;  %v515_v10 = vld [vmem:[#allocation3 + $0x8] sm:$0xff] }
  0x9a   : > { %v305_v13 = vpop.permute.xlu0 %304 }
  0x9b   : > { %v315_v12 = vpop.permute.xlu1 %314 }
  0x9e   : > { %v310_v20 = vpop.permute.xlu0 %309 }
  0x9f   : > { %v320_v15 = vpop.permute.xlu1 %319 }
  0xf0   : > { %v819_v14 = vpop.f32.mrb[0].mxu1 }
  0xf1   : > { %v386_v16 = vadd.f32 %v819_v14, %v315_v12  ;;  %v377_v17 = vpop.f32.mrb[1].mxu1 }
  0xf2   : > { %v378_v18 = vadd.f32 %v377_v17, %v305_v13  ;;  %v820_v19 = vpop.f32.mrb[2].mxu1  ;;  %v516_v17 = vld [vmem:[#allocation3 + $0x10] sm:$0x1] }
  0xf3   : > { %v389_v21 = vadd.f32 %v820_v19, %v320_v15  ;;  %v380_v22 = vpop.f32.mrb[3].mxu1  ;;  %v394_v24 = vmax.f32 %v386_v16, 0.0 }
  0xf4   : > { %v381_v23 = vadd.f32 %v380_v22, %v310_v20  ;;  %v392_v26 = vmax.f32 %v378_v18, 0.0 }
  0xf5   : > { %v395_v25 = vmax.f32 %v389_v21, 0.0  ;;  %v587_v21 = vld [vmem:[#allocation4 + $0x10] sm:$0x1] }
  0xf6   : > { %v393_v27 = vmax.f32 %v381_v23, 0.0  ;;  %v585_v23 = vld [vmem:[#allocation4] sm:$0xff] }
  0xf7   : > { %v397_v28 = vpack.c.bf16 %v395_v25, %v394_v24  ;;  %v586_v25 = vld [vmem:[#allocation4 + $0x8] sm:$0xff] }
  0xf8   : > { %v396_v29 = vpack.c.bf16 %v393_v27, %v392_v26 }
  0xfa   : > { %821 = vmatprep.subr.bf16.mxu1 %v396_v29  ;;  %829 = vmatprep.subr.bf16.mxu0 %v396_v29 }
  0xfb   : > { %822 = vmatpush3.bf16.msra.mxu1 %v396_v29  ;;  %830 = vmatpush3.bf16.xpose.msra.mxu0 %v396_v29 }
  0xfc   : > { %823 = vmatprep.subr.bf16.mxu1 %v397_v28  ;;  %831 = vmatprep.subr.bf16.mxu0 %v397_v28 }
  0xff   : > { %824 = vmatpush3.bf16.msra.mxu1 %v397_v28 }
 0x102   : > { %826 = vmatmul.mubr.msk.bf16.vlgmr.msra.gmra.mrb[4].mxu1 %vm409_vm6, %v888_v30 }
 0x103   : > { %832 = vmatpush3.bf16.xpose.msra.mxu0 %v397_v28 }
 0x1d5   : > { %v827_v31 = vpop.f32.mrb[4].mxu1 }
 0x1d6   : > { %v450_v32 = vpop.f32.mrb[5].mxu1  ;;  %v466_v35 = vmul.f32 0.17677669, %v827_v31 }
 0x1d7   : > { %v464_v33 = vmul.f32 0.17677669, %v450_v32  ;;  %v828_v34 = vpop.f32.mrb[6].mxu1 }
 0x1d8   : > { %v453_v36 = vpop.f32.mrb[7].mxu1  ;;  %v475_v38 = vsel %vm474_vm7, %v466_v35, -inf }
 0x1d9   : > { %v465_v37 = vmul.f32 0.17677669, %v453_v36  ;;  %470 = vmax.xlane.f32.xlu0 %v464_v33 }
 0x1db   : > { %472 = vmax.xlane.f32.xlu1 %v465_v37 }
 0x1dd   : > { %476 = vmax.xlane.f32.xlu0 %v475_v38 }
 0x266   : > { %v471_v40 = vpop.xlane.xlu0 %470 }
 0x267   : > { %v478_v42 = vmax.f32 %v467_v39, %v471_v40 }
 0x268   : > { %v473_v43 = vpop.xlane.xlu1 %472 }
 0x269   : > { %v481_v45 = vsub.f32 %v467_v39, %v478_v42  ;;  %613 = vst.msk [vmem:[#allocation2] sm:$0xff] %vm530_vm8, %v478_v42  ;;  %v479_v46 = vmax.f32 %v468_v41, %v473_v43  ;;  %492 = vperm.xlu0 %883, %v478_v42   ;;  %v958_v39 = vmov (!%p799_p8), 0  }
 0x26a   : > { %v477_v47 = vpop.xlane.xlu0 %476 }
 0x26b   : > { %v482_v48 = vsub.f32 %v468_v41, %v479_v46  ;;  %614 = vst.msk [vmem:[#allocation2 + $0x8] sm:$0xff] %vm530_vm8, %v479_v46  ;;  %v480_v49 = vmax.f32 %v469_v44, %v477_v47  ;;  %497 = vperm.xlu1 %884, %v479_v46   ;;  %v484_v5 = vmul.f32 1.442695, %v481_v45 }
 0x26d   : > { %v486_v50 = vmul.f32 1.442695, %v482_v48  ;;  %v483_v51 = vsub.f32 %v469_v44, %v480_v49  ;;  %615 = vst.msk [vmem:[#allocation2 + $0x10] sm:$0x1] %vm533_vm9, %v480_v49 }
 0x26f   : > { %889 = vpow2.f32 %v486_v50  ;;  %502 = vperm.xlu1 %884, %v480_v49   ;;  %v488_v1 = vmul.f32 1.442695, %v483_v51 }
 0x279   : > { %v890_v52 = vpop.eup %889 }
 0x27a   : > { %595 = vperm.xlu1 %884, %v890_v52   ;;  %v518_v14 = vmul.f32 %v890_v52, %v515_v10 }
 0x2e8   : > { %v493_v53 = vpop.permute.xlu0 %492 }
 0x2e9   : > { %v505_v54 = vsub.f32 %v464_v33, %v493_v53 }
 0x2ea   : > { %v498_v55 = vpop.permute.xlu1 %497 }
 0x2eb   : > { %v508_v56 = vmul.f32 1.442695, %v505_v54  ;;  %v506_v57 = vsub.f32 %v465_v37, %v498_v55 }
 0x2ed   : > { %891 = vpow2.f32 %v508_v56  ;;  %v510_v58 = vmul.f32 1.442695, %v506_v57 }
 0x2ee   : > { %v503_v59 = vpop.permute.xlu1 %502 }
 0x2ef   : > { %893 = vpow2.f32 %v510_v58  ;;  %v507_v60 = vsub.f32 %v466_v35, %v503_v59 }
 0x2f1   : > { %v512_v61 = vmul.f32 1.442695, %v507_v60 }
 0x2f3   : > { %895 = vpow2.f32 %v512_v61 }
 0x2f4   : > { %897 = vpow2.f32 %v488_v1 }
 0x2f5   : > { %899 = vpow2.f32 %v484_v5 }
 0x2f7   : > { %v892_v62 = vpop.eup %891 }
 0x2f8   : > { %520 = vadd.xlane.f32.xlu0 %v892_v62 }
 0x2f9   : > { %v894_v63 = vpop.eup %893  ;;  %v596_v9 = vpop.permute.xlu1 %595 }
 0x2fa   : > { %522 = vadd.xlane.f32.xlu1 %v894_v63  ;;  %v535_v0 = vpack.c.bf16 %v894_v63, %v892_v62  ;;  %v604_v31 = vmul.f32 %v596_v9, %v586_v25 }
 0x2fc   : > { %833 = vmatprep.mubr.bf16.mxu0 %v535_v0 }
 0x2fd   : > { %v896_v2 = vpop.eup %895 }
 0x2fe   : > { %v524_v3 = vsel %vm474_vm7, %v896_v2, 0.0  ;;  %v536_v4 = vpack.c.bf16 %v896_v2, %v896_v2  ;;  %v898_v6 = vpop.eup %897 }
 0x2ff   : > { %525 = vadd.xlane.f32.xlu0 %v524_v3  ;;  %v900_v7 = vpop.eup %899  ;;  %v519_v18 = vmul.f32 %v898_v6, %v516_v17 }
 0x300   : > { %834 = vmatmul.mubr.bf16.vlgmr.msra.gmra.mrb[0].mxu0 %v536_v4  ;;  %v517_v11 = vmul.f32 %v900_v7, %v514_v8 }
 0x30b   : > { %600 = vperm.xlu1 %884, %v898_v6  }
 0x30f   : > { %902 = vset.pattern.permute.xlu1 (!%p799_p8), %v958_v39 }
 0x315   : > { %590 = vperm.xlu0 %883, %v900_v7  }
 0x319   : > { %901 = vset.pattern.permute.xlu0 (!%p799_p8), %v958_v39 }
 0x385   : > { %v521_v12 = vpop.xlane.xlu0 %520 }
 0x386   : > { %v527_v13 = vadd.f32 %v521_v12, %v517_v11 }
 0x387   : > { %v523_v15 = vpop.xlane.xlu1 %522 }
 0x388   : > { %531 = vst.msk [vmem:[#allocation3] sm:$0xff] %vm530_vm8, %v527_v13  ;;  %v528_v16 = vadd.f32 %v523_v15, %v518_v14  ;;  %v800_v14 = vld [vmem:[%s1112_s4] ss:$0 sm:$0xff] (!%p799_p8) }
 0x38a   : > { %532 = vst.msk [vmem:[#allocation3 + $0x8] sm:$0xff] %vm530_vm8, %v528_v16 }
 0x38b   : > { %v601_v22 = vpop.permute.xlu1 %600 }
 0x38c   : > { %v526_v19 = vpop.xlane.xlu0 %525  ;;  %v605_v26 = vmul.f32 %v601_v22, %v587_v21 }
 0x38d   : > { %v529_v20 = vadd.f32 %v526_v19, %v519_v18  ;;  %v801_v18 = vld [vmem:[%s1113_s5] ss:$0 sm:$0xff] (!%p799_p8) }
 0x38f   : > { %534 = vst.msk [vmem:[#allocation3 + $0x10] sm:$0x1] %vm533_vm9, %v529_v20  ;;  %v620_v36 = vld [vmem:[#allocation3] sm:$0xff] (!%p799_p8) }
 0x390   : > { %903 = vrcp.f32 (!%p799_p8), %v620_v36 }
 0x391   : > { %v621_v37 = vld [vmem:[#allocation3 + $0x8] sm:$0xff] (!%p799_p8) }
 0x392   : > { %905 = vrcp.f32 (!%p799_p8), %v621_v37 }
 0x394   : > { %v591_v24 = vpop.permute.xlu0 %590 }
 0x395   : > { %v603_v27 = vmul.f32 %v591_v24, %v585_v23 }
 0x396   : > { %v622_v38 = vld [vmem:[#allocation3 + $0x10] sm:$0x1] (!%p799_p8) }
 0x397   : > { %907 = vrcp.f32 (!%p799_p8), %v622_v38 }
 0x39a   : > { %v904_v40 = vpop.eup (!%p799_p8), %903 }
 0x39b   : > { %631 = vperm.xlu0 (!%p799_p8), %901, %v904_v40  }
 0x39c   : > { %v906_v41 = vpop.eup (!%p799_p8), %905 }
 0x39f   : > { %636 = vperm.xlu0 (!%p799_p8), %901, %v906_v41  }
 0x3a1   : > { %v908_v42 = vpop.eup (!%p799_p8), %907 }
 0x3a2   : > { %641 = vperm.xlu1 (!%p799_p8), %902, %v908_v42  }
 0x3d3   : > { %v835_v28 = vpop.f32.mrb[0].mxu0  ;;  %619 = sbr.rel (%p799_p8) target bundleno = 1373 (0x55d), region = 52 }
 0x3d4   : > { %v608_v29 = vadd.f32 %v835_v28, %v605_v26  ;;  %v571_v30 = vpop.f32.mrb[1].mxu0 }
 0x3d5   : > { %v606_v32 = vadd.f32 %v603_v27, %v571_v30  ;;  %v836_v33 = vpop.f32.mrb[2].mxu0 }
 0x3d6   : > { %612 = vst.msk [vmem:[#allocation4 + $0x10] sm:$0x1] %vm611_vm10, %v608_v29  ;;  %v574_v34 = vpop.f32.mrb[3].mxu0 }
 0x3d7   : > { %609 = vst.msk [vmem:[#allocation4] sm:$0xff] %vm409_vm6, %v606_v32  ;;  %v607_v35 = vadd.f32 %v604_v31, %v574_v34 }
 0x3d9   : > { %610 = vst.msk [vmem:[#allocation4 + $0x8] sm:$0xff] %vm409_vm6, %v607_v35 }
 0x3dd   : > { %v628_v47 = vld [vmem:[#allocation4 + $0x10] sm:$0x1] }
 0x3de   : > { %v626_v43 = vld [vmem:[#allocation4] sm:$0xff] }
 0x3e0   : > { %v627_v46 = vld [vmem:[#allocation4 + $0x8] sm:$0xff] }
 0x41a   : > { %v632_v44 = vpop.permute.xlu0 %631 }
 0x41b   : > { %v644_v45 = vmul.f32 %v632_v44, %v626_v43 }
 0x41d   : > { %v647_v49 = vsel %vm409_vm6, %v644_v45, 0.0 }
 0x41e   : > { %648 = vadd.xlane.f32.xlu1 %v647_v49  ;;  %v637_v50 = vpop.permute.xlu0 %636 }
 0x41f   : > { %v645_v51 = vmul.f32 %v637_v50, %v627_v46 }
 0x421   : > { %v642_v48 = vpop.permute.xlu1 %641  ;;  %v650_v53 = vsel %vm409_vm6, %v645_v51, 0.0 }
 0x422   : > { %v646_v52 = vmul.f32 %v642_v48, %v628_v47  ;;  %651 = vadd.xlane.f32.xlu0 %v650_v53 }
 0x424   : > { %v653_v54 = vsel %vm611_vm10, %v646_v52, 0.0 }
 0x426   : > { %654 = vadd.xlane.f32.xlu0 %v653_v54 }
 0x4ab   : > { %v649_v55 = vpop.xlane.xlu1 %648 }
 0x4ac   : > { %v657_v56 = vmul.f32 0.03125, %v649_v55 }
 0x4ae   : > { %v660_v57 = vsub.f32 %v644_v45, %v657_v56 }
 0x4af   : > { %v652_v58 = vpop.xlane.xlu0 %651 }
 0x4b0   : > { %v658_v59 = vmul.f32 0.03125, %v652_v58  ;;  %v663_v60 = vmul.f32 %v660_v57, %v660_v57  ;;  %v685_v16 = vmul.f32 %v800_v14, %v660_v57 }
 0x4b2   : > { %v661_v61 = vsub.f32 %v645_v51, %v658_v59  ;;  %v666_v62 = vsel %vm409_vm6, %v663_v60, 0.0 }
 0x4b3   : > { %667 = vadd.xlane.f32.xlu1 %v666_v62  ;;  %v655_v63 = vpop.xlane.xlu0 %654 }
 0x4b4   : > { %v659_v0 = vmul.f32 0.03125, %v655_v63  ;;  %v664_v1 = vmul.f32 %v661_v61, %v661_v61  ;;  %v686_v20 = vmul.f32 %v800_v14, %v661_v61 }
 0x4b6   : > { %v662_v2 = vsub.f32 %v646_v52, %v659_v0  ;;  %v669_v3 = vsel %vm409_vm6, %v664_v1, 0.0 }
 0x4b7   : > { %670 = vadd.xlane.f32.xlu0 %v669_v3 }
 0x4b8   : > { %v665_v4 = vmul.f32 %v662_v2, %v662_v2  ;;  %v687_v24 = vmul.f32 %v800_v14, %v662_v2 }
 0x4ba   : > { %v672_v5 = vsel %vm611_vm10, %v665_v4, 0.0 }
 0x4bb   : > { %673 = vadd.xlane.f32.xlu1 %v672_v5 }
 0x540   : > { %v668_v6 = vpop.xlane.xlu1 %667 }
 0x541   : > { %v675_v7 = vmul.f32 0.03125, %v668_v6 }
 0x543   : > { %v688_v8 = vadd.f32 1e-05, %v675_v7 }
 0x544   : > { %v671_v9 = vpop.xlane.xlu0 %670 }
 0x545   : > { %909 = vrsqrt.f32 %v688_v8  ;;  %v676_v10 = vmul.f32 0.03125, %v671_v9 }
 0x547   : > { %v689_v11 = vadd.f32 1e-05, %v676_v10 }
 0x548   : > { %v674_v12 = vpop.xlane.xlu1 %673 }
 0x549   : > { %911 = vrsqrt.f32 %v689_v11  ;;  %v677_v13 = vmul.f32 0.03125, %v674_v12 }
 0x54b   : > { %v690_v15 = vadd.f32 1e-05, %v677_v13 }
 0x54d   : > { %913 = vrsqrt.f32 %v690_v15 }
 0x54f   : > { %v910_v17 = vpop.eup %909 }
 0x550   : > { %v694_v19 = vmul.f32 %v910_v17, %v685_v16 }
 0x552   : > { %v704_v21 = vadd.f32 %v801_v18, %v694_v19 }
 0x553   : > { %v912_v22 = vpop.eup %911 }
 0x554   : > { %707 = vst.msk [vmem:[%s1031_s11] sm:$0xff] %vm409_vm6, %v704_v21  ;;  %v695_v23 = vmul.f32 %v912_v22, %v686_v20 }
 0x556   : > { %v705_v25 = vadd.f32 %v801_v18, %v695_v23 }
 0x557   : > { %v914_v26 = vpop.eup %913 }
 0x558   : > { %708 = vst.msk [vmem:[%s1031_s11 + $0x8] sm:$0xff] %vm409_vm6, %v705_v25  ;;  %v696_v27 = vmul.f32 %v914_v26, %v687_v24 }
 0x55a   : > { %v706_v28 = vadd.f32 %v801_v18, %v696_v27 }
 0x55c   : > { %709 = vst.msk [vmem:[%s1031_s11 + $0x10] sm:$0x1] %vm611_vm10, %v706_v28 }
 0x55d PF: > { %s16_s25 = sadd.s32 1, %s953_s25   ;;  %s1115_s21 = smov %s945_s23 }
 0x55e   : > { %p13_p9 = scmp.ge.s32.totalorder %s16_s25, 10   ;;  %s1116_s22 = smov %s949_s24 }
 0x55f   : > { %s1117_s23 = smov %s1120_s26  ;;  %s1118_s24 = smov %s1124_s27 }
 0x560   :  { %15 = sbr.rel (!%p13_p9) target bundleno = 3 (0x3), region = 82 }

</bundles_post_ra>
